<compile_context>
chip_gen: v6e
topology: v6e:2x2x1
jax: 0.10.0
libtpu: 0.0.40
codegen_flags: <defaults>
</compile_context>

<pallas_src>
from functools import partial

import jax
import jax.numpy as jnp
import numpy as np
from jax.experimental import pallas as pl
from jax.experimental.pallas import tpu as pltpu


def _round_up(x, m):
    return ((x + m - 1) // m) * m


def _linear_kernel(x_ref, wt_ref, b_ref, o_ref):
    # x_ref:  (TM, Kp)   bf16 or f32   (row tile of the input)
    # wt_ref: (Kp, Np)   bf16 or f32   (pre-transposed weight, VMEM-resident)
    # b_ref:  (1,  Np)   f32           (padded bias, VMEM-resident)
    # o_ref:  (TM, Np)   f32
    acc = jnp.dot(x_ref[...], wt_ref[...], preferred_element_type=jnp.float32)
    o_ref[...] = (acc + b_ref[...]).astype(o_ref.dtype)


def _resident_spec(block_shape, index_map):
    """BlockSpec for an operand that is identical for every grid step.

    Requests a single VMEM buffer (no double buffering) since it is DMA'd only
    once; falls back to the default if this jax version lacks pipeline_mode.
    """
    try:
        return pl.BlockSpec(block_shape, index_map, pipeline_mode=pl.Buffered(1))
    except TypeError:
        return pl.BlockSpec(block_shape, index_map)


def prep_linear_params(weight, bias, *, use_bf16_matmul=True):
    """One-time layout prep: transpose to (K, N), pad to lane-dense tiles, cast.

    weight: (out_dim, in_dim) f32 (PyTorch layout)   -> wt: (Kp, Np)
    bias:   (out_dim,)        f32                    -> bp: (1, Np) f32
    """
    N, K = weight.shape
    Kp = _round_up(K, 128)
    Np = _round_up(N, 128)
    wt = jnp.zeros((Kp, Np), jnp.float32).at[:K, :N].set(
        jnp.asarray(weight, jnp.float32).T)
    bp = jnp.zeros((1, Np), jnp.float32).at[0, :N].set(
        jnp.asarray(bias, jnp.float32))
    if use_bf16_matmul:
        wt = wt.astype(jnp.bfloat16)
    return wt, bp


def _choose_tm(batch, block_rows=256, row_align=16):
    """Row-tile size: minimal padding, multiple of 16, >=2 tiles when possible."""
    n_tiles = max(1, -(-batch // block_rows))
    if batch >= 2 * row_align:
        n_tiles = max(n_tiles, 2)        # keep both v7x TensorCores busy
    return _round_up(-(-batch // n_tiles), row_align)


@partial(jax.jit, static_argnames=("tm", "n_out"))
def _linear_forward_padded(x, wt, bp, *, tm, n_out):
    """x: (B, K) f32; wt: (Kp, Np) prepped weight; bp: (1, Np) f32 bias."""
    B, K = x.shape
    Kp, Np = wt.shape
    Bp = _round_up(B, tm)

    # Zero-pad the activations to the padded (Bp, Kp) tile grid; padded rows /
    # cols contribute zeros so the sliced result is exact.
    xp = jnp.zeros((Bp, Kp), wt.dtype).at[:B, :K].set(x.astype(wt.dtype))

    grid = (Bp // tm,)

    # Real VMEM footprint (x + out double-buffered, weight/bias resident) plus
    # generous headroom so the explicit limit never becomes the failure mode.
    xb = xp.dtype.itemsize
    wb = wt.dtype.itemsize
    vmem_bytes = (2 * tm * Kp * xb          # x row tile, double buffered
                  + 2 * Kp * Np * wb        # weight (upper bound: 2 bufs)
                  + 2 * Np * 4              # bias
                  + 2 * tm * Np * 4)        # output tile, double buffered
    vmem_limit = int(min(100 << 20, max(vmem_bytes + (4 << 20), 8 << 20)))

    # Advertise the *true* work, not the padded work.
    flops = 2 * B * K * n_out
    bytes_accessed = (B * K * xb + K * n_out * wb + n_out * 4 + B * n_out * 4)

    out = pl.pallas_call(
        _linear_kernel,
        out_shape=jax.ShapeDtypeStruct((Bp, Np), jnp.float32),
        grid_spec=pltpu.PrefetchScalarGridSpec(
            num_scalar_prefetch=0,
            grid=grid,
            in_specs=[
                pl.BlockSpec((tm, Kp), lambda i: (i, 0)),     # x row tiles
                _resident_spec((Kp, Np), lambda i: (0, 0)),   # weight: resident
                _resident_spec((1, Np), lambda i: (0, 0)),    # bias:   resident
            ],
            out_specs=pl.BlockSpec((tm, Np), lambda i: (i, 0)),
        ),
        compiler_params=pltpu.CompilerParams(
            dimension_semantics=("parallel",),
            vmem_limit_bytes=vmem_limit,
        ),
        cost_estimate=pl.CostEstimate(
            flops=flops, transcendentals=0, bytes_accessed=bytes_accessed),
    )(xp, wt, bp)

    # Slice the padding back off; keep the f32 accumulation dtype.
    return out[:B, :n_out]


def linear_forward(x, weight, bias, *, use_bf16_matmul=True, block_rows=256):
    """Convenience one-shot API (preps params each call; prefer PallasClassifier)."""
    wt, bp = prep_linear_params(weight, bias, use_bf16_matmul=use_bf16_matmul)
    tm = _choose_tm(x.shape[0], block_rows)
    return _linear_forward_padded(jnp.asarray(x, jnp.float32), wt, bp,
                                  tm=tm, n_out=weight.shape[0])


class PallasClassifier:
    """Mirror of PytorchClassifierAsSklearnClassifier using the Pallas kernel."""

    def __init__(self, in_dim, out_dim, label_to_class, key, *, block_rows=256):
        assert out_dim == len(label_to_class)
        kw, kb = jax.random.split(key)
        bound = 1.0 / np.sqrt(in_dim)
        self.weight = jax.random.uniform(
            kw, (out_dim, in_dim), jnp.float32, -bound, bound)
        self.bias = jax.random.uniform(
            kb, (out_dim,), jnp.float32, -bound, bound)
        self.label_to_class = label_to_class
        self.in_dim = in_dim
        self.out_dim = out_dim
        self.block_rows = block_rows
        # One-time layout prep (transpose + lane-dense pad + cast), cached so
        # forward never re-touches the raw PyTorch-layout weight.
        self._wt_bf16, self._bp = prep_linear_params(
            self.weight, self.bias, use_bf16_matmul=True)
        self._wt_f32, _ = prep_linear_params(
            self.weight, self.bias, use_bf16_matmul=False)

    def forward(self, x, *, use_bf16_matmul=True):
        x = jnp.asarray(x, jnp.float32)
        wt = self._wt_bf16 if use_bf16_matmul else self._wt_f32
        tm = _choose_tm(x.shape[0], self.block_rows)
        return _linear_forward_padded(x, wt, self._bp, tm=tm, n_out=self.out_dim)

    def predict(self, x):
        # TODO(synk): fuse the row-argmax into the kernel to avoid writing the
        # full padded logits; for now argmax + label mapping stay as glue code.
        logits = self.forward(jnp.asarray(x, jnp.float32))
        pred_labels = np.asarray(jnp.argmax(logits, axis=-1))
        return np.array([self.label_to_class[int(l)] for l in pred_labels])


if __name__ == "__main__":
    key = jax.random.PRNGKey(0)
    kx, kx2, kp = jax.random.split(key, 3)

    batch, in_dim, out_dim = 8, 32, 4
    label_to_class = ["cat", "dog", "bird", "fish"]

    model = PallasClassifier(in_dim, out_dim, label_to_class, kp)
    x = jax.random.normal(kx, (batch, in_dim), jnp.float32)

    w_np = np.asarray(model.weight, np.float32)
    b_np = np.asarray(model.bias, np.float32)
    x_np = np.asarray(x, np.float32)
    ref_f32 = x_np @ w_np.T + b_np

    # f32 MXU path: tight check against the float32 reference.
    out_f32 = jax.block_until_ready(model.forward(x, use_bf16_matmul=False))
    np.testing.assert_allclose(np.asarray(out_f32), ref_f32,
                               rtol=1e-4, atol=1e-4)

    # bf16-operand MXU path (default): loose check (bf16 operand rounding only).
    out_bf16 = jax.block_until_ready(model.forward(x, use_bf16_matmul=True))
    np.testing.assert_allclose(np.asarray(out_bf16), ref_f32,
                               rtol=5e-2, atol=5e-2)

    # Multi-tile grid path: batch large enough to split into >=2 row tiles
    # (exercises the parallel batch grid + row padding correctness).
    batch2 = 40
    x2 = jax.random.normal(kx2, (batch2, in_dim), jnp.float32)
    ref2 = np.asarray(x2, np.float32) @ w_np.T + b_np
    out2 = jax.block_until_ready(model.forward(x2, use_bf16_matmul=True))
    np.testing.assert_allclose(np.asarray(out2), ref2, rtol=5e-2, atol=5e-2)

    # Exercise predict() path too (argmax + label mapping stay in glue code).
    preds = model.predict(x_np)
    assert preds.shape == (batch,)

    print("KERNEL_OK")
</pallas_src>

<mosaic_0001>
module attributes {stable_mosaic.version = 11 : i64} {
  func.func @_linear_kernel(%arg0: i32, %arg1: memref<16x128xf32, #tpu.memory_space<vmem>>, %arg2: memref<128x128xf32, #tpu.memory_space<vmem>>, %arg3: memref<1x128xf32, #tpu.memory_space<vmem>>, %arg4: memref<16x128xf32, #tpu.memory_space<vmem>>) attributes {dimension_semantics = [#tpu.dimension_semantics<parallel>], iteration_bounds = array<i64: 1>, scalar_prefetch = 0 : i64, scratch_operands = 0 : i64, tpu.core_type = #tpu.core_type<tc>, window_params = [{transform_indices = @transform_0, window_bounds = array<i64: 16, 128>}, {pipeline_mode = #tpu.pipeline_mode<synchronous>, transform_indices = @transform_1, window_bounds = array<i64: 128, 128>}, {pipeline_mode = #tpu.pipeline_mode<synchronous>, transform_indices = @transform_2, window_bounds = array<i64: 1, 128>}, {transform_indices = @transform_3, window_bounds = array<i64: 16, 128>}]} {
    %c0 = arith.constant 0 : index
    %c0_0 = arith.constant 0 : index
    %0 = vector.load %arg1[%c0, %c0_0] : memref<16x128xf32, #tpu.memory_space<vmem>>, vector<16x128xf32>
    %c0_1 = arith.constant 0 : index
    %c0_2 = arith.constant 0 : index
    %1 = vector.load %arg2[%c0_1, %c0_2] : memref<128x128xf32, #tpu.memory_space<vmem>>, vector<128x128xf32>
    %cst = arith.constant dense<0.000000e+00> : vector<16x128xf32>
    %2 = tpu.matmul %0, %1, %cst {dimension_numbers = #tpu.dot_dimension_numbers<[1], [0], [0], [1], [0, 0, 1, 1], [], []>} : vector<16x128xf32>, vector<128x128xf32>, vector<16x128xf32> -> vector<16x128xf32>
    %c0_3 = arith.constant 0 : index
    %c0_4 = arith.constant 0 : index
    %3 = vector.load %arg3[%c0_3, %c0_4] : memref<1x128xf32, #tpu.memory_space<vmem>>, vector<1x128xf32>
    %4 = vector.broadcast %3 : vector<1x128xf32> to vector<16x128xf32>
    %5 = arith.addf %2, %4 : vector<16x128xf32>
    %c0_5 = arith.constant 0 : index
    %c0_6 = arith.constant 0 : index
    %6 = vector.load %arg4[%c0_5, %c0_6] : memref<16x128xf32, #tpu.memory_space<vmem>>, vector<16x128xf32>
    tpu.vector_store %arg4[%c0_5, %c0_6], %5 {strides = array<i32>} : memref<16x128xf32, #tpu.memory_space<vmem>>, vector<16x128xf32>,
    return
  }
  func.func @transform_0(%arg0: i32) -> (i32, i32) {
    %c0_i32 = arith.constant 0 : i32
    %c0_i32_0 = arith.constant 0 : i32
    return %arg0, %c0_i32 : i32, i32
  }
  func.func @transform_1(%arg0: i32) -> (i32, i32) {
    %c0_i32 = arith.constant 0 : i32
    %c0_i32_0 = arith.constant 0 : i32
    %c0_i32_1 = arith.constant 0 : i32
    return %c0_i32, %c0_i32_0 : i32, i32
  }
  func.func @transform_2(%arg0: i32) -> (i32, i32) {
    %c0_i32 = arith.constant 0 : i32
    %c0_i32_0 = arith.constant 0 : i32
    %c0_i32_1 = arith.constant 0 : i32
    return %c0_i32, %c0_i32_0 : i32, i32
  }
  func.func @transform_3(%arg0: i32) -> (i32, i32) {
    %c0_i32 = arith.constant 0 : i32
    %c0_i32_0 = arith.constant 0 : i32
    return %arg0, %c0_i32 : i32, i32
  }
}

</mosaic_0001>

<bundles_post_ra>
// kernel: _linear_forward_padded.1
= control target key start
LH: loop header
LB: loop body
LE: loop exit
PB: predicated region body
PF: predicated region fallthrough
CT: control target
= control target key end

     0   :  { %8 = vsyncpa [#allocation3], 0  ;;  %s214_s12 = smov [#allocation2]   ;;  %s255_s0 = inlined_call_operand.vmem [shape: f32[16,128], index: 0, kind: input, shape index: {}]   ;;  %s256_s1 = inlined_call_operand.hbm [shape: f32[128,128], index: 1, kind: input, shape index: {}]   ;;  %s257_s2 = inlined_call_operand.vmem [shape: f32[1,128], index: 2, kind: input, shape index: {}]   ;;  %s258_s3 = inlined_call_operand.vmem [shape: f32[16,128], index: 3, kind: output, shape index: {}]  }
   0x1   :  { %s16_s13 = sshll.u32 %s214_s12, 4  ;;  %s17_s13 = int_to_ptr.vmem [resolvable:$true] %s16_s13 }
   0x2   :  { %s200_s14 = scalar_lea.vmem %s17_s13, 2048  ;;  %p205_p1 = scmp.lt.s32.totalorder %s17_s13, %s17_s13 }
   0x3   :  { %p201_p0 = scmp.ne.s32.totalorder %s17_s13, %s200_s14  ;;  %p206_p2 = scmp.lt.s32.totalorder %s200_s14, %s200_s14 }
   0x5   :  { %p207_p3 = por %p206_p2, %p205_p1 }
   0x7   :  { %p208_p4 = pnand %p207_p3, %p201_p0 }
   0x9   :  { %211 = shalt.err (!%p208_p4)
}
   0xa   :  { %s215_s15 = smov 128   ;;  %s216_s16 = smov 8  }
   0xb   :  { %22 = dma.hbm_to_vmem [thread:$0]  %s256_s1, 2048, %s17_s13, [#allocation3], %s215_s15, %s215_s15, %s216_s16  }
   0xc   :  { %212 = dma.done.wait [#allocation3], 2048  }
   0xd   :  { %213 = vsyncadd [#allocation3], 4294965248  ;;  %v45_v0 = vld [vmem:[#allocation2 + $0x78] sm:$0xff]  ;;  %v44_v1 = vld [vmem:[#allocation2 + $0x70] sm:$0xff] }
   0xe   :  { %154 = vmatprep.subr.mxu0 %v45_v0  ;;  %v43_v2 = vld [vmem:[#allocation2 + $0x68] sm:$0xff]  ;;  %v42_v3 = vld [vmem:[#allocation2 + $0x60] sm:$0xff]  ;;  %v41_v5 = vld [vmem:[#allocation2 + $0x58] sm:$0xff] }
   0xf   :  { %155 = vmatpush3.msra.mxu0 %v45_v0  ;;  %v28_v4 = vld [vmem:[%s255_s0] sm:$0xff]  ;;  %v40_v6 = vld [vmem:[#allocation2 + $0x50] sm:$0xff]  ;;  %v39_v7 = vld [vmem:[#allocation2 + $0x48] sm:$0xff] }
  0x10   :  { %156 = vmatprep.subr.mxu0 %v44_v1  ;;  %186 = vmatprep.mubr.f32.mxu0 %v28_v4  ;;  %v38_v8 = vld [vmem:[#allocation2 + $0x40] sm:$0xff]  ;;  %v37_v9 = vld [vmem:[#allocation2 + $0x38] sm:$0xff]  ;;  %v36_v10 = vld [vmem:[#allocation2 + $0x30] sm:$0xff] }
  0x11   :  { %157 = vmatpush3.msra.mxu0 %v44_v1  ;;  %v35_v11 = vld [vmem:[#allocation2 + $0x28] sm:$0xff]  ;;  %v34_v12 = vld [vmem:[#allocation2 + $0x20] sm:$0xff]  ;;  %v33_v13 = vld [vmem:[#allocation2 + $0x18] sm:$0xff] }
  0x12   :  { %158 = vmatprep.subr.mxu0 %v43_v2  ;;  %v32_v14 = vld [vmem:[#allocation2 + $0x10] sm:$0xff]  ;;  %v31_v15 = vld [vmem:[#allocation2 + $0x8] sm:$0xff]  ;;  %v30_v16 = vld [vmem:[#allocation2] sm:$0xff] }
  0x13   :  { %159 = vmatpush3.msra.mxu0 %v43_v2  ;;  %v29_v17 = vld [vmem:[%s255_s0 + $0x8] sm:$0xff]  ;;  %v135_v18 = vld [vmem:[%s257_s2] ss:$0 sm:$0xff] }
  0x14   :  { %160 = vmatprep.subr.mxu0 %v42_v3 }
  0x15   :  { %161 = vmatpush3.msra.mxu0 %v42_v3 }
  0x16   :  { %162 = vmatprep.subr.mxu0 %v41_v5 }
  0x17   :  { %163 = vmatpush3.msra.mxu0 %v41_v5 }
  0x18   :  { %164 = vmatprep.subr.mxu0 %v40_v6 }
  0x19   :  { %165 = vmatpush3.msra.mxu0 %v40_v6 }
  0x1a   :  { %166 = vmatprep.subr.mxu0 %v39_v7 }
  0x1b   :  { %167 = vmatpush3.msra.mxu0 %v39_v7 }
  0x1c   :  { %168 = vmatprep.subr.mxu0 %v38_v8 }
  0x1d   :  { %169 = vmatpush3.msra.mxu0 %v38_v8 }
  0x1e   :  { %170 = vmatprep.subr.mxu0 %v37_v9 }
  0x1f   :  { %171 = vmatpush3.msra.mxu0 %v37_v9 }
  0x20   :  { %172 = vmatprep.subr.mxu0 %v36_v10 }
  0x21   :  { %173 = vmatpush3.msra.mxu0 %v36_v10 }
  0x22   :  { %174 = vmatprep.subr.mxu0 %v35_v11 }
  0x23   :  { %175 = vmatpush3.msra.mxu0 %v35_v11 }
  0x24   :  { %176 = vmatprep.subr.mxu0 %v34_v12 }
  0x25   :  { %177 = vmatpush3.msra.mxu0 %v34_v12 }
  0x26   :  { %178 = vmatprep.subr.mxu0 %v33_v13 }
  0x27   :  { %179 = vmatpush3.msra.mxu0 %v33_v13 }
  0x28   :  { %180 = vmatprep.subr.mxu0 %v32_v14 }
  0x29   :  { %181 = vmatpush3.msra.mxu0 %v32_v14 }
  0x2a   :  { %182 = vmatprep.subr.mxu0 %v31_v15 }
  0x2b   :  { %183 = vmatpush3.msra.mxu0 %v31_v15 }
  0x2c   :  { %184 = vmatprep.subr.mxu0 %v30_v16 }
  0x2d   :  { %185 = vmatpush3.msra.mxu0 %v30_v16 }
  0x2e   :  { %187 = vmatmul.mubr.f32.vlgmr.msra.gmra.mxu0 %v29_v17 }
  0xee   :  { %v188_v19 = vpop.f32.mrf.mxu0 }
  0xef   :  { %v125_v20 = vadd.f32 %v188_v19, %v135_v18 }
  0xf0   :  { %v119_v21 = vpop.f32.mrf.mxu0 }
  0xf1   :  { %129 = vst [vmem:[%s258_s3 + $0x8] sm:$0xff] %v125_v20  ;;  %v120_v22 = vadd.f32 %v135_v18, %v119_v21 }
  0xf3   :  { %128 = vst [vmem:[%s258_s3] sm:$0xff] %v120_v22 }
  0xf4   :  { %134 = vsyncpa [#allocation3], 1 }

</bundles_post_ra>
